<compile_context>
chip_gen: v6e
topology: v6e:2x2x1
jax: 0.10.0
libtpu: 0.0.40
codegen_flags: <defaults>
</compile_context>

<pallas_src>
import jax
import jax.numpy as jnp
from jax.experimental import pallas as pl
from jax.experimental.pallas import tpu as pltpu

IN_FEATURES = 13
OUT_FEATURES = 13


def _linear_kernel(wt_ref, b_ref, x_ref, o_ref):
    # One batch tile in native layout: y[tile, :] = x[tile, :] @ W.T + b
    x = x_ref[...]      # (TB, 13)   batch on sublanes, features on lanes
    wt = wt_ref[...]    # (13, 13)   = weight.T  ([in_features, out_features])
    b = b_ref[...]      # (1, 13)    broadcast over batch rows
    # MXU matmul with f32 accumulation. (MXU is heavily under-filled at 13x13,
    # but the kernel is DMA-bound, so this is not on the critical path.)
    acc = jnp.dot(x, wt, preferred_element_type=jnp.float32)
    o_ref[...] = (acc + b).astype(o_ref.dtype)


def _round_up(n, m):
    return ((n + m - 1) // m) * m


def linear_gaussian_predictor(x, weight, bias, *, tile_b=8192):
    """y = x @ weight.T + bias   (PyTorch nn.Linear(13, 13) semantics).

    x:      (B, 13)  float32
    weight: (13, 13) float32  (PyTorch layout: [out_features, in_features])
    bias:   (13,)    float32
    tile_b: batch rows per grid step (rounded to a multiple of 8).
            ~8192 is a good default for v5e/v6e; 16384-32768 works on v7x.
    """
    B = x.shape[0]

    # Batch tile: multiple of 8 sublanes, no larger than (rounded-up) batch.
    tb = min(_round_up(max(int(tile_b), 8), 8), _round_up(max(B, 1), 8))
    grid = (pl.cdiv(B, tb),)

    w_t = weight.T                          # (13, 13) [in, out] — tiny one-off copy
    b2 = bias.reshape(1, OUT_FEATURES)      # (1, 13)

    itemsize = jnp.dtype(x.dtype).itemsize
    cost = pl.CostEstimate(
        flops=2 * B * IN_FEATURES * OUT_FEATURES,
        transcendentals=0,
        bytes_accessed=(B * IN_FEATURES + B * OUT_FEATURES) * itemsize
        + (IN_FEATURES * OUT_FEATURES + OUT_FEATURES) * 4,
    )

    out = pl.pallas_call(
        _linear_kernel,
        out_shape=jax.ShapeDtypeStruct((B, OUT_FEATURES), x.dtype),
        grid_spec=pltpu.PrefetchScalarGridSpec(
            num_scalar_prefetch=0,
            grid=grid,
            in_specs=[
                # Weight / bias: full-array blocks, constant index maps ->
                # VMEM-resident across all batch tiles.
                pl.BlockSpec((IN_FEATURES, OUT_FEATURES), lambda i: (0, 0)),
                pl.BlockSpec((1, OUT_FEATURES), lambda i: (0, 0)),
                # x tiles: sublane dim is a multiple of 8, lane dim equals the
                # full array dim (13) -> satisfies the (8,128) BlockSpec rule.
                pl.BlockSpec((tb, IN_FEATURES), lambda i: (i, 0)),
            ],
            out_specs=pl.BlockSpec((tb, OUT_FEATURES), lambda i: (i, 0)),
        ),
        compiler_params=pltpu.CompilerParams(
            # Independent batch tiles -> megacore sharding on v7x.
            dimension_semantics=("parallel",),
            # Double-buffered in+out tiles at TB=8192 need ~16 MiB; raise the
            # scoped limit so v5e's 16 MiB default is not the binding constraint.
            vmem_limit_bytes=32 * 1024 * 1024,
        ),
        cost_estimate=cost,
    )(w_t, b2, x)

    return out


def init_params(key):
    # Deterministic synthetic init mimicking nn.Linear's uniform(-1/sqrt(fan_in), ...)
    kw, kb = jax.random.split(key)
    bound = 1.0 / jnp.sqrt(jnp.float32(IN_FEATURES))
    weight = jax.random.uniform(
        kw, (OUT_FEATURES, IN_FEATURES), jnp.float32, -bound, bound)
    bias = jax.random.uniform(
        kb, (OUT_FEATURES,), jnp.float32, -bound, bound)
    return weight, bias


if __name__ == "__main__":
    key = jax.random.PRNGKey(0)
    kx, kp = jax.random.split(key)

    batch = 8
    x = jax.random.normal(kx, (batch, IN_FEATURES), jnp.float32)
    weight, bias = init_params(kp)

    y = linear_gaussian_predictor(x, weight, bias)
    y = jax.block_until_ready(y)

    # Reference check against plain JAX (same semantics as torch nn.Linear).
    y_ref = x @ weight.T + bias
    assert y.shape == (batch, OUT_FEATURES)
    assert jnp.allclose(y, y_ref, atol=1e-5, rtol=1e-5)

    print("KERNEL_OK")
</pallas_src>

<mosaic_0001>
module attributes {stable_mosaic.version = 11 : i64} {
  func.func @_linear_kernel(%arg0: i32, %arg1: memref<13x13xf32, #tpu.memory_space<vmem>>, %arg2: memref<1x13xf32, #tpu.memory_space<vmem>>, %arg3: memref<8x13xf32, #tpu.memory_space<vmem>>, %arg4: memref<8x13xf32, #tpu.memory_space<vmem>>) attributes {dimension_semantics = [#tpu.dimension_semantics<parallel>], iteration_bounds = array<i64: 1>, scalar_prefetch = 0 : i64, scratch_operands = 0 : i64, tpu.core_type = #tpu.core_type<tc>, window_params = [{pipeline_mode = #tpu.pipeline_mode<synchronous>, transform_indices = @transform_0, window_bounds = array<i64: 13, 13>}, {pipeline_mode = #tpu.pipeline_mode<synchronous>, transform_indices = @transform_1, window_bounds = array<i64: 1, 13>}, {transform_indices = @transform_2, window_bounds = array<i64: 8, 13>}, {transform_indices = @transform_3, window_bounds = array<i64: 8, 13>}]} {
    %c0 = arith.constant 0 : index
    %c0_0 = arith.constant 0 : index
    %0 = vector.load %arg3[%c0, %c0_0] : memref<8x13xf32, #tpu.memory_space<vmem>>, vector<8x13xf32>
    %c0_1 = arith.constant 0 : index
    %c0_2 = arith.constant 0 : index
    %1 = vector.load %arg1[%c0_1, %c0_2] : memref<13x13xf32, #tpu.memory_space<vmem>>, vector<13x13xf32>
    %c0_3 = arith.constant 0 : index
    %c0_4 = arith.constant 0 : index
    %2 = vector.load %arg2[%c0_3, %c0_4] : memref<1x13xf32, #tpu.memory_space<vmem>>, vector<1x13xf32>
    %cst = arith.constant dense<0.000000e+00> : vector<8x13xf32>
    %3 = tpu.matmul %0, %1, %cst {dimension_numbers = #tpu.dot_dimension_numbers<[1], [0], [0], [1], [0, 0, 1, 1], [], []>} : vector<8x13xf32>, vector<13x13xf32>, vector<8x13xf32> -> vector<8x13xf32>
    %4 = vector.broadcast %2 : vector<1x13xf32> to vector<8x13xf32>
    %5 = arith.addf %3, %4 : vector<8x13xf32>
    %c0_5 = arith.constant 0 : index
    %c0_6 = arith.constant 0 : index
    %6 = vector.load %arg4[%c0_5, %c0_6] : memref<8x13xf32, #tpu.memory_space<vmem>>, vector<8x13xf32>
    tpu.vector_store %arg4[%c0_5, %c0_6], %5 {strides = array<i32>} : memref<8x13xf32, #tpu.memory_space<vmem>>, vector<8x13xf32>,
    return
  }
  func.func @transform_0(%arg0: i32) -> (i32, i32) {
    %c0_i32 = arith.constant 0 : i32
    %c0_i32_0 = arith.constant 0 : i32
    %c0_i32_1 = arith.constant 0 : i32
    return %c0_i32, %c0_i32_0 : i32, i32
  }
  func.func @transform_1(%arg0: i32) -> (i32, i32) {
    %c0_i32 = arith.constant 0 : i32
    %c0_i32_0 = arith.constant 0 : i32
    %c0_i32_1 = arith.constant 0 : i32
    return %c0_i32, %c0_i32_0 : i32, i32
  }
  func.func @transform_2(%arg0: i32) -> (i32, i32) {
    %c0_i32 = arith.constant 0 : i32
    %c0_i32_0 = arith.constant 0 : i32
    return %arg0, %c0_i32 : i32, i32
  }
  func.func @transform_3(%arg0: i32) -> (i32, i32) {
    %c0_i32 = arith.constant 0 : i32
    %c0_i32_0 = arith.constant 0 : i32
    return %arg0, %c0_i32 : i32, i32
  }
}

</mosaic_0001>

<bundles_post_ra>
// kernel: tpu_custom_call.1
= control target key start
LH: loop header
LB: loop body
LE: loop exit
PB: predicated region body
PF: predicated region fallthrough
CT: control target
= control target key end

     0   :  { %8 = vsyncpa [#allocation3], 0  ;;  %s271_s0 = inlined_call_operand.hbm [shape: f32[13,13], index: 0, kind: input, shape index: {}]   ;;  %s272_s1 = inlined_call_operand.vmem [shape: f32[1,13], index: 1, kind: input, shape index: {}]   ;;  %s273_s2 = inlined_call_operand.hbm [shape: f32[8,13], index: 2, kind: input, shape index: {}]   ;;  %s274_s3 = inlined_call_operand.hbm [shape: f32[8,13], index: 3, kind: output, shape index: {}]  }
   0x1   :  { %9 = vsyncpa [#allocation6], 0 }
   0x2   :  { %10 = vsyncpa [#allocation4], 0  ;;  %s232_s12 = smov [#allocation2]  }
   0x3   :  { %s16_s13 = sshll.u32 %s232_s12, 4  ;;  %s17_s13 = int_to_ptr.vmem [resolvable:$true] %s16_s13 }
   0x4   :  { %s174_s14 = scalar_lea.vmem %s17_s13, 256  ;;  %p179_p1 = scmp.lt.s32.totalorder %s17_s13, %s17_s13 }
   0x5   :  { %p175_p0 = scmp.ne.s32.totalorder %s17_s13, %s174_s14  ;;  %p180_p2 = scmp.lt.s32.totalorder %s174_s14, %s174_s14 }
   0x7   :  { %p181_p3 = por %p180_p2, %p179_p1 }
   0x9   :  { %p182_p4 = pnand %p181_p3, %p175_p0 }
   0xb   :  { %185 = shalt.err (!%p182_p4)
}
   0xc   :  { %s233_s15 = smov 128   ;;  %s234_s16 = smov 8  }
   0xd   :  { %22 = dma.hbm_to_vmem [thread:$0]  %s271_s0, 256, %s17_s13, [#allocation3], %s233_s15, %s233_s15, %s234_s16  }
   0xe   :  { %s235_s19 = smov [#allocation5]  }
   0xf   :  { %s31_s20 = sshll.u32 %s235_s19, 4  ;;  %s32_s20 = int_to_ptr.vmem [resolvable:$true] %s31_s20 }
  0x10   :  { %s194_s21 = scalar_lea.vmem %s32_s20, 128  ;;  %p199_p6 = scmp.lt.s32.totalorder %s32_s20, %s32_s20 }
  0x11   :  { %p195_p5 = scmp.ne.s32.totalorder %s32_s20, %s194_s21  ;;  %p200_p7 = scmp.lt.s32.totalorder %s194_s21, %s194_s21 }
  0x13   :  { %p201_p8 = por %p200_p7, %p199_p6 }
  0x15   :  { %p202_p9 = pnand %p201_p8, %p195_p5 }
  0x17   :  { %205 = shalt.err (!%p202_p9)
}
  0x18   :  { %34 = dma.hbm_to_vmem [thread:$0]  %s273_s2, 128, %s32_s20, [#allocation6]  }
  0x19   :  { %226 = dma.done.wait [#allocation3], 256  }
  0x1a   :  { %227 = vsyncadd [#allocation3], 4294967040 }
  0x1b   :  { %228 = dma.done.wait [#allocation6], 128  }
  0x1c   :  { %229 = vsyncadd [#allocation6], 4294967168  ;;  %v236_v0 = vmov 0.0   ;;  %vm237_vm0 = vmmov 0   ;;  %vm55_vm1 = vcmask 1044480   ;;  %v42_v2 = vld [vmem:[#allocation2] sm:$0xff] }
  0x1d   :  { %152 = vmatprep.subr.mxu0 %v236_v0  ;;  %156 = vmatprep.mubr.msk.f32.mxu0 %vm237_vm0, %v236_v0  ;;  %v43_v1 = vld [vmem:[#allocation2 + $0x8] sm:$0x1f]  ;;  %v41_v3 = vld [vmem:[#allocation5] sm:$0xff]  ;;  %vm51_vm2 = vcmask 105472   ;;  %v146_v4 = vld [vmem:[%s272_s1] ss:$0 sm:$0xff] }
  0x1e   :  { %153 = vmatpush3.msk.msra.mxu0 %vm55_vm1, %v43_v1  ;;  %s238_s2 = smov [#allocation7]  }
  0x1f   :  { %154 = vmatprep.subr.mxu0 %v236_v0  ;;  %s136_s25 = sshll.u32 %s238_s2, 4  ;;  %s137_s25 = int_to_ptr.vmem [resolvable:$true] %s136_s25 }
  0x20   :  { %155 = vmatpush3.msra.mxu0 %v42_v2  ;;  %s206_s26 = scalar_lea.vmem %s137_s25, 128  ;;  %p211_p11 = scmp.lt.s32.totalorder %s137_s25, %s137_s25 }
  0x21   :  { %157 = vmatmul.mubr.msk.f32.vlgmr.msra.gmra.mxu0 %vm51_vm2, %v41_v3  ;;  %p207_p10 = scmp.ne.s32.totalorder %s137_s25, %s206_s26  ;;  %p212_p12 = scmp.lt.s32.totalorder %s206_s26, %s206_s26 }
  0x23   :  { %p213_p13 = por %p212_p12, %p211_p11 }
  0x25   :  { %p214_p0 = pnand %p213_p13, %p207_p10 }
  0xe1   :  { %v125_v5 = vpop.f32.mrf.mxu0 }
  0xe2   :  { %v126_v6 = vadd.f32 %v146_v4, %v125_v5 }
  0xe3   :  { %v158_v7 = vpop.f32.mrf.mxu0 }
  0xe4   :  { %129 = vst.msk [vmem:[#allocation7] sm:$0xff] %vm51_vm2, %v126_v6 }
  0xe5   :  { %217 = shalt.err (!%p214_p0)
}
  0xe6   :  { %139 = dma.vmem_to_hbm [thread:$0]  %s137_s25, 128, %s274_s3, [#allocation4]  }
  0xe7   :  { %230 = dma.done.wait [#allocation4], 128  }
  0xe8   :  { %231 = vsyncadd [#allocation4], 4294967168 }
  0xe9   :  { %143 = vsyncpa [#allocation3], 1 }
  0xea   :  { %144 = vsyncpa [#allocation6], 1 }
  0xeb   :  { %145 = vsyncpa [#allocation4], 1 }

</bundles_post_ra>
